<compile_context>
chip_gen: v6e
topology: v6e:2x2x1
jax: 0.10.0
libtpu: 0.0.40
codegen_flags: <defaults>
</compile_context>

<pallas_src>
import functools
import math

import jax
import jax.numpy as jnp
from jax.experimental import pallas as pl
from jax.experimental.pallas import tpu as pltpu


# ---------------------------------------------------------------------------
# Kernel
# ---------------------------------------------------------------------------
def _actor_kernel(state_ref, unc_ref, w0s_ref, w0u_ref, b0_ref,
                  w1_ref, b1_ref, w2_ref, b2_ref, out_ref, *, max_action):
    """One batch tile of the Actor_with_uncertainty forward (depth=2).

    Concat fused:  relu([state | u] @ W0 + b0)
                 = relu(state @ W0[:S] + u * W0[S:] + b0)
    MXU operands in the weights' dtype (bf16 path), f32 accumulation,
    f32 elementwise (v5e-safe VPU/EUP).
    """
    # Layer 0 (concat fused).
    z = jnp.dot(state_ref[...].astype(w0s_ref.dtype), w0s_ref[...],
                preferred_element_type=jnp.float32)
    z = z + unc_ref[...] * w0u_ref[...] + b0_ref[...]      # all f32 (VPU path)
    a = jnp.maximum(z, 0.0)

    # Layer 1: relu(a @ W1 + b1)
    z = jnp.dot(a.astype(w1_ref.dtype), w1_ref[...],
                preferred_element_type=jnp.float32)
    a = jnp.maximum(z + b1_ref[...], 0.0)

    # Output layer (columns possibly zero-padded to a lane-dense 128 multiple):
    # max_action * tanh(a @ W2 + b2)
    z = jnp.dot(a.astype(w2_ref.dtype), w2_ref[...],
                preferred_element_type=jnp.float32)
    out_ref[...] = (max_action * jnp.tanh(z + b2_ref[...])).astype(out_ref.dtype)


# ---------------------------------------------------------------------------
# Wrapper helpers
# ---------------------------------------------------------------------------
def _round_up(x, m):
    return ((x + m - 1) // m) * m


def _choose_block_m(B, row_align):
    """Batch-tile size.

    Coarse tiles amortize the ~0.35us per-grid-step overhead; a >=2-step grid
    lets dimension_semantics=("parallel",) shard the batch across v7x's two
    TensorCores.  At tiny B one full-batch tile is the only legal choice.
    """
    if B < 2 * row_align:
        return B                                   # block == full dim is always legal
    half = _round_up(pl.cdiv(B, 2), row_align)     # >= 2 grid steps
    return min(1024, half)                         # cap tile (VMEM + diminishing returns)


def _vmem_limit_bytes(block_m, S, H, A_pad, mm_itemsize):
    """Computed scoped-VMEM budget: double-buffered IO + resident weights +
    generous headroom for f32 intermediates, clamped to [4 MiB, 32 MiB]."""
    weights = (S * H + H * H + H * A_pad) * mm_itemsize + (4 * H + A_pad) * 4
    io = block_m * (S * mm_itemsize + 4 + A_pad * 4)
    intermediates = 4 * block_m * max(H, A_pad) * 4
    total = 2 * (weights + io) + intermediates + (1 << 20)
    return int(min(max(total, 4 << 20), 32 << 20))


# ---------------------------------------------------------------------------
# Public forward
# ---------------------------------------------------------------------------
def actor_with_uncertainty_forward(state, uncertain, params, max_action, *,
                                   mm_dtype=jnp.bfloat16, block_m=None):
    """Forward pass of Actor_with_uncertainty (depth=2) as one Pallas call.

    params: dict with
      w0_s (S, H)   first-layer weights for the state features
      w0_u (1, H)   first-layer weights for the uncertainty feature
      b0 (1, H), w1 (H, H), b1 (1, H), w2 (H, A), b2 (1, A)

    mm_dtype: dtype of the MXU operands (state / w0_s / w1 / w2).  bf16 halves
      the dominant HBM streams and doubles MXU throughput on all of v5e/v6e/v7x;
      accumulation and elementwise stay f32.  Pass jnp.float32 for an exact path.
    """
    mm_dtype = jnp.dtype(mm_dtype)
    f32 = jnp.float32

    state = jnp.asarray(state).astype(mm_dtype)       # dominant HBM read stream
    uncertain = jnp.asarray(uncertain).astype(f32)

    w0_s = jnp.asarray(params["w0_s"]).astype(mm_dtype)
    w0_u = jnp.asarray(params["w0_u"]).astype(f32)
    b0 = jnp.asarray(params["b0"]).astype(f32)
    w1 = jnp.asarray(params["w1"]).astype(mm_dtype)
    b1 = jnp.asarray(params["b1"]).astype(f32)
    w2 = jnp.asarray(params["w2"]).astype(mm_dtype)
    b2 = jnp.asarray(params["b2"]).astype(f32)

    B, S = state.shape
    H = w1.shape[0]
    A = w2.shape[1]

    # Lane-dense output: pad the narrow output layer to a multiple of 128 lanes
    # so the last matmul fills the MXU output lanes and stores are unmasked.
    # Gated off at very large B where the writeback inflation would dominate.
    A_pad = A
    if A % 128 != 0 and B <= 4096:
        A_pad = _round_up(A, 128)
        w2 = jnp.pad(w2, ((0, 0), (0, A_pad - A)))
        b2 = jnp.pad(b2, ((0, 0), (0, A_pad - A)))

    row_align = 16 if mm_dtype.itemsize < 4 else 8     # bf16 sublane packing
    if block_m is None:
        block_m = _choose_block_m(B, row_align)
    block_m = min(block_m, B)
    grid = (pl.cdiv(B, block_m),)
    # NOTE: when B % block_m != 0 the last tile carries padded rows; they only
    # pass through relu/tanh (bounded, no traps) and their writeback is dropped.

    operands = (state, uncertain, w0_s, w0_u, b0, w1, b1, w2, b2)

    flops = 2 * B * (S * H + H * H + H * A_pad) + 2 * B * H
    bytes_accessed = sum(int(x.size) * x.dtype.itemsize for x in operands)
    bytes_accessed += B * A_pad * 4
    cost = pl.CostEstimate(flops=flops, transcendentals=B * A_pad,
                           bytes_accessed=bytes_accessed)

    kernel = functools.partial(_actor_kernel, max_action=float(max_action))

    def batch_spec(cols):
        return pl.BlockSpec((block_m, cols), lambda i: (i, 0))

    def build(single_buffer_weights):
        if single_buffer_weights and hasattr(pl, "Buffered"):
            def const_spec(shape):
                # Block index never changes -> single buffer (no dead double
                # buffer / per-step DMA bookkeeping for resident weights).
                return pl.BlockSpec(shape, lambda i: (0, 0),
                                    pipeline_mode=pl.Buffered(1))
        else:
            def const_spec(shape):
                return pl.BlockSpec(shape, lambda i: (0, 0))

        return pl.pallas_call(
            kernel,
            out_shape=jax.ShapeDtypeStruct((B, A_pad), f32),
            grid=grid,
            in_specs=[
                batch_spec(S),            # state
                batch_spec(1),            # uncertainty column
                const_spec((S, H)),       # w0_s
                const_spec((1, H)),       # w0_u
                const_spec((1, H)),       # b0
                const_spec((H, H)),       # w1
                const_spec((1, H)),       # b1
                const_spec((H, A_pad)),   # w2
                const_spec((1, A_pad)),   # b2
            ],
            out_specs=pl.BlockSpec((block_m, A_pad), lambda i: (i, 0)),
            compiler_params=pltpu.CompilerParams(
                dimension_semantics=("parallel",),
                vmem_limit_bytes=_vmem_limit_bytes(block_m, S, H, A_pad,
                                                   mm_dtype.itemsize),
            ),
            cost_estimate=cost,
        )

    try:
        out = build(single_buffer_weights=True)(*operands)
    except Exception:  # pragma: no cover - pipeline_mode unsupported -> default buffering
        out = build(single_buffer_weights=False)(*operands)

    return out[:, :A] if A_pad != A else out


# ---------------------------------------------------------------------------
# Demo / correctness check
# ---------------------------------------------------------------------------
def _init_linear(key, in_features, out_features):
    """PyTorch-default-style init: U(-1/sqrt(fan_in), 1/sqrt(fan_in))."""
    kw, kb = jax.random.split(key)
    bound = 1.0 / math.sqrt(in_features)
    w = jax.random.uniform(kw, (in_features, out_features), jnp.float32,
                           minval=-bound, maxval=bound)
    b = jax.random.uniform(kb, (1, out_features), jnp.float32,
                           minval=-bound, maxval=bound)
    return w, b


if __name__ == "__main__":
    # Small shapes consistent with the module (depth=2 -> 2 hidden layers + output).
    batch = 40          # not a multiple of the tile -> exercises the padded last tile
    state_dim = 31      # state_dim + 1 (uncertainty) = 32
    action_dim = 8
    num_neurons = 128
    max_action = 2.0

    key = jax.random.PRNGKey(0)
    k_state, k_unc, k0, k1, k2 = jax.random.split(key, 5)

    state = jax.random.normal(k_state, (batch, state_dim), jnp.float32)
    uncertain = jax.random.uniform(k_unc, (batch, 1), jnp.float32)

    w0, b0 = _init_linear(k0, state_dim + 1, num_neurons)
    w1, b1 = _init_linear(k1, num_neurons, num_neurons)
    w2, b2 = _init_linear(k2, num_neurons, action_dim)

    # Concat is pre-split once into w0_s / w0_u (kernel fuses the concat).
    params = dict(w0_s=w0[:state_dim], w0_u=w0[state_dim:], b0=b0,
                  w1=w1, b1=b1, w2=w2, b2=b2)

    # Exact f32 path (tight check) and the default bf16-streaming path.
    out_f32 = jax.block_until_ready(
        actor_with_uncertainty_forward(state, uncertain, params, max_action,
                                       mm_dtype=jnp.float32))
    out_bf16 = jax.block_until_ready(
        actor_with_uncertainty_forward(state, uncertain, params, max_action))

    # Pure-JAX reference (same semantics as the PyTorch forward, f32).
    su = jnp.concatenate([state, uncertain], axis=1)
    a = jax.nn.relu(su @ w0 + b0)
    a = jax.nn.relu(a @ w1 + b1)
    ref = max_action * jnp.tanh(a @ w2 + b2)

    assert out_f32.shape == (batch, action_dim)
    assert out_bf16.shape == (batch, action_dim)
    assert jnp.allclose(out_f32, ref, atol=1e-5, rtol=1e-5)
    # bf16 MXU operands with f32 accumulation -> loosened tolerance.
    assert jnp.allclose(out_bf16, ref, atol=3e-2, rtol=3e-2)

    print("KERNEL_OK")
</pallas_src>

<mosaic_0001>
module attributes {stable_mosaic.version = 11 : i64} {
  func.func @_actor_kernel(%arg0: i32, %arg1: memref<24x31xf32, #tpu.memory_space<vmem>>, %arg2: memref<24x1xf32, #tpu.memory_space<vmem>>, %arg3: memref<31x128xf32, #tpu.memory_space<vmem>>, %arg4: memref<1x128xf32, #tpu.memory_space<vmem>>, %arg5: memref<1x128xf32, #tpu.memory_space<vmem>>, %arg6: memref<128x128xf32, #tpu.memory_space<vmem>>, %arg7: memref<1x128xf32, #tpu.memory_space<vmem>>, %arg8: memref<128x128xf32, #tpu.memory_space<vmem>>, %arg9: memref<1x128xf32, #tpu.memory_space<vmem>>, %arg10: memref<24x128xf32, #tpu.memory_space<vmem>>) attributes {dimension_semantics = [#tpu.dimension_semantics<parallel>], iteration_bounds = array<i64: 2>, scalar_prefetch = 0 : i64, scratch_operands = 0 : i64, tpu.core_type = #tpu.core_type<tc>, window_params = [{transform_indices = @transform_0, window_bounds = array<i64: 24, 31>}, {transform_indices = @transform_1, window_bounds = array<i64: 24, 1>}, {pipeline_mode = #tpu.pipeline_mode<synchronous>, transform_indices = @transform_2, window_bounds = array<i64: 31, 128>}, {pipeline_mode = #tpu.pipeline_mode<synchronous>, transform_indices = @transform_3, window_bounds = array<i64: 1, 128>}, {pipeline_mode = #tpu.pipeline_mode<synchronous>, transform_indices = @transform_4, window_bounds = array<i64: 1, 128>}, {pipeline_mode = #tpu.pipeline_mode<synchronous>, transform_indices = @transform_5, window_bounds = array<i64: 128, 128>}, {pipeline_mode = #tpu.pipeline_mode<synchronous>, transform_indices = @transform_6, window_bounds = array<i64: 1, 128>}, {pipeline_mode = #tpu.pipeline_mode<synchronous>, transform_indices = @transform_7, window_bounds = array<i64: 128, 128>}, {pipeline_mode = #tpu.pipeline_mode<synchronous>, transform_indices = @transform_8, window_bounds = array<i64: 1, 128>}, {transform_indices = @transform_9, window_bounds = array<i64: 24, 128>}]} {
    %c0 = arith.constant 0 : index
    %c0_0 = arith.constant 0 : index
    %0 = vector.load %arg1[%c0, %c0_0] : memref<24x31xf32, #tpu.memory_space<vmem>>, vector<24x31xf32>
    %c0_1 = arith.constant 0 : index
    %c0_2 = arith.constant 0 : index
    %1 = vector.load %arg3[%c0_1, %c0_2] : memref<31x128xf32, #tpu.memory_space<vmem>>, vector<31x128xf32>
    %cst = arith.constant dense<0.000000e+00> : vector<24x128xf32>
    %2 = tpu.matmul %0, %1, %cst {dimension_numbers = #tpu.dot_dimension_numbers<[1], [0], [0], [1], [0, 0, 1, 1], [], []>} : vector<24x31xf32>, vector<31x128xf32>, vector<24x128xf32> -> vector<24x128xf32>
    %c0_3 = arith.constant 0 : index
    %c0_4 = arith.constant 0 : index
    %3 = vector.load %arg2[%c0_3, %c0_4] : memref<24x1xf32, #tpu.memory_space<vmem>>, vector<24x1xf32>
    %c0_5 = arith.constant 0 : index
    %c0_6 = arith.constant 0 : index
    %4 = vector.load %arg4[%c0_5, %c0_6] : memref<1x128xf32, #tpu.memory_space<vmem>>, vector<1x128xf32>
    %5 = vector.broadcast %3 : vector<24x1xf32> to vector<24x128xf32>
    %6 = vector.broadcast %4 : vector<1x128xf32> to vector<24x128xf32>
    %7 = arith.mulf %5, %6 : vector<24x128xf32>
    %8 = arith.addf %2, %7 : vector<24x128xf32>
    %c0_7 = arith.constant 0 : index
    %c0_8 = arith.constant 0 : index
    %9 = vector.load %arg5[%c0_7, %c0_8] : memref<1x128xf32, #tpu.memory_space<vmem>>, vector<1x128xf32>
    %10 = vector.broadcast %9 : vector<1x128xf32> to vector<24x128xf32>
    %11 = arith.addf %8, %10 : vector<24x128xf32>
    %cst_9 = arith.constant 0.000000e+00 : f32
    %12 = vector.broadcast %cst_9 : f32 to vector<24x128xf32>
    %13 = arith.maximumf %11, %12 : vector<24x128xf32>
    %c0_10 = arith.constant 0 : index
    %c0_11 = arith.constant 0 : index
    %14 = vector.load %arg6[%c0_10, %c0_11] : memref<128x128xf32, #tpu.memory_space<vmem>>, vector<128x128xf32>
    %cst_12 = arith.constant dense<0.000000e+00> : vector<24x128xf32>
    %15 = tpu.matmul %13, %14, %cst_12 {dimension_numbers = #tpu.dot_dimension_numbers<[1], [0], [0], [1], [0, 0, 1, 1], [], []>} : vector<24x128xf32>, vector<128x128xf32>, vector<24x128xf32> -> vector<24x128xf32>
    %c0_13 = arith.constant 0 : index
    %c0_14 = arith.constant 0 : index
    %16 = vector.load %arg7[%c0_13, %c0_14] : memref<1x128xf32, #tpu.memory_space<vmem>>, vector<1x128xf32>
    %17 = vector.broadcast %16 : vector<1x128xf32> to vector<24x128xf32>
    %18 = arith.addf %15, %17 : vector<24x128xf32>
    %cst_15 = arith.constant 0.000000e+00 : f32
    %19 = vector.broadcast %cst_15 : f32 to vector<24x128xf32>
    %20 = arith.maximumf %18, %19 : vector<24x128xf32>
    %c0_16 = arith.constant 0 : index
    %c0_17 = arith.constant 0 : index
    %21 = vector.load %arg8[%c0_16, %c0_17] : memref<128x128xf32, #tpu.memory_space<vmem>>, vector<128x128xf32>
    %cst_18 = arith.constant dense<0.000000e+00> : vector<24x128xf32>
    %22 = tpu.matmul %20, %21, %cst_18 {dimension_numbers = #tpu.dot_dimension_numbers<[1], [0], [0], [1], [0, 0, 1, 1], [], []>} : vector<24x128xf32>, vector<128x128xf32>, vector<24x128xf32> -> vector<24x128xf32>
    %c0_19 = arith.constant 0 : index
    %c0_20 = arith.constant 0 : index
    %23 = vector.load %arg9[%c0_19, %c0_20] : memref<1x128xf32, #tpu.memory_space<vmem>>, vector<1x128xf32>
    %24 = vector.broadcast %23 : vector<1x128xf32> to vector<24x128xf32>
    %25 = arith.addf %22, %24 : vector<24x128xf32>
    %26 = math.tanh %25 : vector<24x128xf32>
    %cst_21 = arith.constant 2.000000e+00 : f32
    %27 = vector.broadcast %cst_21 : f32 to vector<24x128xf32>
    %28 = arith.mulf %27, %26 : vector<24x128xf32>
    %c0_22 = arith.constant 0 : index
    %c0_23 = arith.constant 0 : index
    %29 = vector.load %arg10[%c0_22, %c0_23] : memref<24x128xf32, #tpu.memory_space<vmem>>, vector<24x128xf32>
    tpu.vector_store %arg10[%c0_22, %c0_23], %28 {strides = array<i32>} : memref<24x128xf32, #tpu.memory_space<vmem>>, vector<24x128xf32>,
    return
  }
  func.func @transform_0(%arg0: i32) -> (i32, i32) {
    %c0_i32 = arith.constant 0 : i32
    %c0_i32_0 = arith.constant 0 : i32
    return %arg0, %c0_i32 : i32, i32
  }
  func.func @transform_1(%arg0: i32) -> (i32, i32) {
    %c0_i32 = arith.constant 0 : i32
    %c0_i32_0 = arith.constant 0 : i32
    return %arg0, %c0_i32 : i32, i32
  }
  func.func @transform_2(%arg0: i32) -> (i32, i32) {
    %c0_i32 = arith.constant 0 : i32
    %c0_i32_0 = arith.constant 0 : i32
    %c0_i32_1 = arith.constant 0 : i32
    return %c0_i32, %c0_i32_0 : i32, i32
  }
  func.func @transform_3(%arg0: i32) -> (i32, i32) {
    %c0_i32 = arith.constant 0 : i32
    %c0_i32_0 = arith.constant 0 : i32
    %c0_i32_1 = arith.constant 0 : i32
    return %c0_i32, %c0_i32_0 : i32, i32
  }
  func.func @transform_4(%arg0: i32) -> (i32, i32) {
    %c0_i32 = arith.constant 0 : i32
    %c0_i32_0 = arith.constant 0 : i32
    %c0_i32_1 = arith.constant 0 : i32
    return %c0_i32, %c0_i32_0 : i32, i32
  }
  func.func @transform_5(%arg0: i32) -> (i32, i32) {
    %c0_i32 = arith.constant 0 : i32
    %c0_i32_0 = arith.constant 0 : i32
    %c0_i32_1 = arith.constant 0 : i32
    return %c0_i32, %c0_i32_0 : i32, i32
  }
  func.func @transform_6(%arg0: i32) -> (i32, i32) {
    %c0_i32 = arith.constant 0 : i32
    %c0_i32_0 = arith.constant 0 : i32
    %c0_i32_1 = arith.constant 0 : i32
    return %c0_i32, %c0_i32_0 : i32, i32
  }
  func.func @transform_7(%arg0: i32) -> (i32, i32) {
    %c0_i32 = arith.constant 0 : i32
    %c0_i32_0 = arith.constant 0 : i32
    %c0_i32_1 = arith.constant 0 : i32
    return %c0_i32, %c0_i32_0 : i32, i32
  }
  func.func @transform_8(%arg0: i32) -> (i32, i32) {
    %c0_i32 = arith.constant 0 : i32
    %c0_i32_0 = arith.constant 0 : i32
    %c0_i32_1 = arith.constant 0 : i32
    return %c0_i32, %c0_i32_0 : i32, i32
  }
  func.func @transform_9(%arg0: i32) -> (i32, i32) {
    %c0_i32 = arith.constant 0 : i32
    %c0_i32_0 = arith.constant 0 : i32
    return %arg0, %c0_i32 : i32, i32
  }
}

module attributes {stable_mosaic.version = 11 : i64} {
  func.func @_actor_kernel(%arg0: i32, %arg1: memref<24x31xf32, #tpu.memory_space<vmem>>, %arg2: memref<24x1xf32, #tpu.memory_space<vmem>>, %arg3: memref<31x128xf32, #tpu.memory_space<vmem>>, %arg4: memref<1x128xf32, #tpu.memory_space<vmem>>, %arg5: memref<1x128xf32, #tpu.memory_space<vmem>>, %arg6: memref<128x128xf32, #tpu.memory_space<vmem>>, %arg7: memref<1x128xf32, #tpu.memory_space<vmem>>, %arg8: memref<128x128xf32, #tpu.memory_space<vmem>>, %arg9: memref<1x128xf32, #tpu.memory_space<vmem>>, %arg10: memref<24x128xf32, #tpu.memory_space<vmem>>) attributes {dimension_semantics = [#tpu.dimension_semantics<parallel>], iteration_bounds = array<i64: 2>, scalar_prefetch = 0 : i64, scratch_operands = 0 : i64, tpu.core_type = #tpu.core_type<tc>, window_params = [{transform_indices = @transform_0, window_bounds = array<i64: 24, 31>}, {transform_indices = @transform_1, window_bounds = array<i64: 24, 1>}, {pipeline_mode = #tpu.pipeline_mode<synchronous>, transform_indices = @transform_2, window_bounds = array<i64: 31, 128>}, {pipeline_mode = #tpu.pipeline_mode<synchronous>, transform_indices = @transform_3, window_bounds = array<i64: 1, 128>}, {pipeline_mode = #tpu.pipeline_mode<synchronous>, transform_indices = @transform_4, window_bounds = array<i64: 1, 128>}, {pipeline_mode = #tpu.pipeline_mode<synchronous>, transform_indices = @transform_5, window_bounds = array<i64: 128, 128>}, {pipeline_mode = #tpu.pipeline_mode<synchronous>, transform_indices = @transform_6, window_bounds = array<i64: 1, 128>}, {pipeline_mode = #tpu.pipeline_mode<synchronous>, transform_indices = @transform_7, window_bounds = array<i64: 128, 128>}, {pipeline_mode = #tpu.pipeline_mode<synchronous>, transform_indices = @transform_8, window_bounds = array<i64: 1, 128>}, {transform_indices = @transform_9, window_bounds = array<i64: 24, 128>}]} {
    %c0 = arith.constant 0 : index
    %c0_0 = arith.constant 0 : index
    %0 = vector.load %arg1[%c0, %c0_0] : memref<24x31xf32, #tpu.memory_space<vmem>>, vector<24x31xf32>
    %c0_1 = arith.constant 0 : index
    %c0_2 = arith.constant 0 : index
    %1 = vector.load %arg3[%c0_1, %c0_2] : memref<31x128xf32, #tpu.memory_space<vmem>>, vector<31x128xf32>
    %cst = arith.constant dense<0.000000e+00> : vector<24x128xf32>
    %2 = tpu.matmul %0, %1, %cst {dimension_numbers = #tpu.dot_dimension_numbers<[1], [0], [0], [1], [0, 0, 1, 1], [], []>} : vector<24x31xf32>, vector<31x128xf32>, vector<24x128xf32> -> vector<24x128xf32>
    %c0_3 = arith.constant 0 : index
    %c0_4 = arith.constant 0 : index
    %3 = vector.load %arg2[%c0_3, %c0_4] : memref<24x1xf32, #tpu.memory_space<vmem>>, vector<24x1xf32>
    %c0_5 = arith.constant 0 : index
    %c0_6 = arith.constant 0 : index
    %4 = vector.load %arg4[%c0_5, %c0_6] : memref<1x128xf32, #tpu.memory_space<vmem>>, vector<1x128xf32>
    %5 = vector.broadcast %3 : vector<24x1xf32> to vector<24x128xf32>
    %6 = vector.broadcast %4 : vector<1x128xf32> to vector<24x128xf32>
    %7 = arith.mulf %5, %6 : vector<24x128xf32>
    %8 = arith.addf %2, %7 : vector<24x128xf32>
    %c0_7 = arith.constant 0 : index
    %c0_8 = arith.constant 0 : index
    %9 = vector.load %arg5[%c0_7, %c0_8] : memref<1x128xf32, #tpu.memory_space<vmem>>, vector<1x128xf32>
    %10 = vector.broadcast %9 : vector<1x128xf32> to vector<24x128xf32>
    %11 = arith.addf %8, %10 : vector<24x128xf32>
    %cst_9 = arith.constant 0.000000e+00 : f32
    %12 = vector.broadcast %cst_9 : f32 to vector<24x128xf32>
    %13 = arith.maximumf %11, %12 : vector<24x128xf32>
    %c0_10 = arith.constant 0 : index
    %c0_11 = arith.constant 0 : index
    %14 = vector.load %arg6[%c0_10, %c0_11] : memref<128x128xf32, #tpu.memory_space<vmem>>, vector<128x128xf32>
    %cst_12 = arith.constant dense<0.000000e+00> : vector<24x128xf32>
    %15 = tpu.matmul %13, %14, %cst_12 {dimension_numbers = #tpu.dot_dimension_numbers<[1], [0], [0], [1], [0, 0, 1, 1], [], []>} : vector<24x128xf32>, vector<128x128xf32>, vector<24x128xf32> -> vector<24x128xf32>
    %c0_13 = arith.constant 0 : index
    %c0_14 = arith.constant 0 : index
    %16 = vector.load %arg7[%c0_13, %c0_14] : memref<1x128xf32, #tpu.memory_space<vmem>>, vector<1x128xf32>
    %17 = vector.broadcast %16 : vector<1x128xf32> to vector<24x128xf32>
    %18 = arith.addf %15, %17 : vector<24x128xf32>
    %cst_15 = arith.constant 0.000000e+00 : f32
    %19 = vector.broadcast %cst_15 : f32 to vector<24x128xf32>
    %20 = arith.maximumf %18, %19 : vector<24x128xf32>
    %c0_16 = arith.constant 0 : index
    %c0_17 = arith.constant 0 : index
    %21 = vector.load %arg8[%c0_16, %c0_17] : memref<128x128xf32, #tpu.memory_space<vmem>>, vector<128x128xf32>
    %cst_18 = arith.constant dense<0.000000e+00> : vector<24x128xf32>
    %22 = tpu.matmul %20, %21, %cst_18 {dimension_numbers = #tpu.dot_dimension_numbers<[1], [0], [0], [1], [0, 0, 1, 1], [], []>} : vector<24x128xf32>, vector<128x128xf32>, vector<24x128xf32> -> vector<24x128xf32>
    %c0_19 = arith.constant 0 : index
    %c0_20 = arith.constant 0 : index
    %23 = vector.load %arg9[%c0_19, %c0_20] : memref<1x128xf32, #tpu.memory_space<vmem>>, vector<1x128xf32>
    %24 = vector.broadcast %23 : vector<1x128xf32> to vector<24x128xf32>
    %25 = arith.addf %22, %24 : vector<24x128xf32>
    %26 = math.tanh %25 : vector<24x128xf32>
    %cst_21 = arith.constant 2.000000e+00 : f32
    %27 = vector.broadcast %cst_21 : f32 to vector<24x128xf32>
    %28 = arith.mulf %27, %26 : vector<24x128xf32>
    %c0_22 = arith.constant 0 : index
    %c0_23 = arith.constant 0 : index
    %29 = vector.load %arg10[%c0_22, %c0_23] : memref<24x128xf32, #tpu.memory_space<vmem>>, vector<24x128xf32>
    tpu.vector_store %arg10[%c0_22, %c0_23], %28 {strides = array<i32>} : memref<24x128xf32, #tpu.memory_space<vmem>>, vector<24x128xf32>,
    return
  }
  func.func @transform_0(%arg0: i32) -> (i32, i32) {
    %c0_i32 = arith.constant 0 : i32
    %c0_i32_0 = arith.constant 0 : i32
    return %arg0, %c0_i32 : i32, i32
  }
  func.func @transform_1(%arg0: i32) -> (i32, i32) {
    %c0_i32 = arith.constant 0 : i32
    %c0_i32_0 = arith.constant 0 : i32
    return %arg0, %c0_i32 : i32, i32
  }
  func.func @transform_2(%arg0: i32) -> (i32, i32) {
    %c0_i32 = arith.constant 0 : i32
    %c0_i32_0 = arith.constant 0 : i32
    %c0_i32_1 = arith.constant 0 : i32
    return %c0_i32, %c0_i32_0 : i32, i32
  }
  func.func @transform_3(%arg0: i32) -> (i32, i32) {
    %c0_i32 = arith.constant 0 : i32
    %c0_i32_0 = arith.constant 0 : i32
    %c0_i32_1 = arith.constant 0 : i32
    return %c0_i32, %c0_i32_0 : i32, i32
  }
  func.func @transform_4(%arg0: i32) -> (i32, i32) {
    %c0_i32 = arith.constant 0 : i32
    %c0_i32_0 = arith.constant 0 : i32
    %c0_i32_1 = arith.constant 0 : i32
    return %c0_i32, %c0_i32_0 : i32, i32
  }
  func.func @transform_5(%arg0: i32) -> (i32, i32) {
    %c0_i32 = arith.constant 0 : i32
    %c0_i32_0 = arith.constant 0 : i32
    %c0_i32_1 = arith.constant 0 : i32
    return %c0_i32, %c0_i32_0 : i32, i32
  }
  func.func @transform_6(%arg0: i32) -> (i32, i32) {
    %c0_i32 = arith.constant 0 : i32
    %c0_i32_0 = arith.constant 0 : i32
    %c0_i32_1 = arith.constant 0 : i32
    return %c0_i32, %c0_i32_0 : i32, i32
  }
  func.func @transform_7(%arg0: i32) -> (i32, i32) {
    %c0_i32 = arith.constant 0 : i32
    %c0_i32_0 = arith.constant 0 : i32
    %c0_i32_1 = arith.constant 0 : i32
    return %c0_i32, %c0_i32_0 : i32, i32
  }
  func.func @transform_8(%arg0: i32) -> (i32, i32) {
    %c0_i32 = arith.constant 0 : i32
    %c0_i32_0 = arith.constant 0 : i32
    %c0_i32_1 = arith.constant 0 : i32
    return %c0_i32, %c0_i32_0 : i32, i32
  }
  func.func @transform_9(%arg0: i32) -> (i32, i32) {
    %c0_i32 = arith.constant 0 : i32
    %c0_i32_0 = arith.constant 0 : i32
    return %arg0, %c0_i32 : i32, i32
  }
}

</mosaic_0001>

<bundles_post_ra>
// kernel: tpu_custom_call.1
= control target key start
LH: loop header
LB: loop body
LE: loop exit
PB: predicated region body
PF: predicated region fallthrough
CT: control target
= control target key end

     0   :  { %s1579_s0 = inlined_call_operand.vmem [shape: f32[40,31], index: 0, kind: input, shape index: {}]   ;;  %s1580_s1 = inlined_call_operand.vmem [shape: f32[40,1], index: 1, kind: input, shape index: {}]   ;;  %s1581_s2 = inlined_call_operand.vmem [shape: f32[31,128], index: 2, kind: input, shape index: {}]   ;;  %s1582_s3 = inlined_call_operand.vmem [shape: f32[1,128], index: 3, kind: input, shape index: {}]   ;;  %s1583_s4 = inlined_call_operand.vmem [shape: f32[1,128], index: 4, kind: input, shape index: {}]   ;;  %s1584_s5 = inlined_call_operand.hbm [shape: f32[128,128], index: 5, kind: input, shape index: {}]   ;;  %s1585_s6 = inlined_call_operand.vmem [shape: f32[1,128], index: 6, kind: input, shape index: {}]   ;;  %s1586_s7 = inlined_call_operand.hbm [shape: f32[128,128], index: 7, kind: input, shape index: {}]   ;;  %s1587_s8 = inlined_call_operand.vmem [shape: f32[1,128], index: 8, kind: input, shape index: {}]   ;;  %s1588_s9 = inlined_call_operand.hbm [shape: f32[40,128], index: 9, kind: output, shape index: {}]  }
   0x1   :  { %1590 = sst [smem:[#allocation11_spill]] %s1584_s5 }
   0x2   :  { %14 = vsyncpa [#allocation3], 0 }
   0x3   :  { %15 = vsyncpa [#allocation6], 0 }
   0x4   :  { %16 = vsyncpa [#allocation4], 0 }
   0x5   :  { %18 = vsyncpa [#allocation4 + $0x1], 0  ;;  %s1333_s30 = smov 0   ;;  %s1335_s10 = smov 0  }
   0x6   :  { %s1337_s11 = smov 0   ;;  %s1339_s12 = smov 0  }
   0x7 LB: > { %s1354_s13 = sadd.s32 4294967295, %s1271_s12   ;;  %s906_s14 = sadd.s32 4294967294, %s1271_s12   ;;  %s1271_s12 = sphi %s1339_s12, %s1604_s12   ;;  %s1267_s11 = sphi %s1337_s11, %s1603_s11   ;;  %s1263_s10 = sphi %s1335_s10, %s1602_s10   ;;  %s1259_s30 = sphi %s1333_s30, %s1601_s30  }
   0x8   : > { %s1358_s15 = sadd.s32 1, %s1271_s12   ;;  %s230_s16 = sadd.s32 1, %s1267_s11 }
   0x9   : > { %s227_s17 = ssub.s32 %s1271_s12, %s1358_s15  ;;  %p240_p0 = scmp.ne.s32.totalorder %s1267_s11, %s1263_s10 }
   0xa   : > { %p228_p1 = scmp.eq.s32.totalorder %s227_s17, 0  ;;  %p241_p2 = scmp.eq.s32.totalorder %s1354_s13, 1 }
   0xb   : > { %p246_p3 = scmp.ne.s32.totalorder %s1263_s10, %s1259_s30  ;;  %p247_p4 = scmp.eq.s32.totalorder %s906_s14, 1 }
   0xc   : > { %s1369_s18 = scalar_select %p228_p1, %s1267_s11, %s230_s16  }
   0xd   : > { %p1371_p5 = por %p241_p2, %p240_p0  ;;  %p1375_p6 = por %p247_p4, %p246_p3 }
   0xe   : > { %p907_p7 = scmp.ge.s32.totalorder %s1271_s12, 1  ;;  %p254_p8 = scmp.lt.s32.totalorder %s1271_s12, 3 }
   0xf   : > { %s1592_s20 = scalar_select %p1375_p6, 1, 0 }
  0x10   : > { %p1589_p9 = scmp.eq.s32.totalorder %s1354_s13, 0  ;;  %p1382_p10 = pnand %p907_p7, %p254_p8 }
  0x11   : > { %s1273_s22 = smov [#allocation2]   ;;  %s1274_s25 = smov [#allocation5]  }
  0x12   : > { %s275_s23 = sshll.u32 %s1273_s22, 4  ;;  %p1086_p11 = pneg %p1382_p10  ;;  %s276_s23 = int_to_ptr.vmem [resolvable:$true] %s275_s23 }
  0x13   : > { %s291_s26 = sshll.u32 %s1274_s25, 4  ;;  %s1162_s27 = scalar_lea.vmem %s276_s23, 2048  ;;  %s292_s26 = int_to_ptr.vmem [resolvable:$true] %s291_s26 }
  0x14   : > { %p1390_p12 = pnand %p1589_p9, %p1086_p11  ;;  %p1163_p0 = scmp.ne.s32.totalorder %s276_s23, %s1162_s27 }
  0x15   : > { %p1170_p3 = scmp.lt.s32.totalorder %s276_s23, %s276_s23  ;;  %p1171_p4 = scmp.lt.s32.totalorder %s1162_s27, %s1162_s27 }
  0x16   : > { %p1153_p13 = pneg %p1390_p12 }
  0x17   : > { %p1172_p7 = por %p1171_p4, %p1170_p3 }
  0x18   : > { %p1165_p1 = pnand %p1163_p0, %p1153_p13 }
  0x1a   : > { %p1166_p2 = pneg %p1165_p1 }
  0x1c   : > { %p1173_p8 = pnand %p1172_p7, %p1166_p2 }
  0x1e   : > { %1176 = shalt.err (!%p1173_p8)
}
  0x1f   : > { %s1275_s28 = smov 128   ;;  %s1276_s29 = smov 8  }
  0x20   : > { %s1595_s5 = sld [smem:[#allocation11_spill]]  ;;  %s1188_s17 = scalar_lea.vmem %s292_s26, 2048 }
  0x21   : > { %p1189_p11 = scmp.ne.s32.totalorder %s292_s26, %s1188_s17  ;;  %p1196_p9 = scmp.lt.s32.totalorder %s292_s26, %s292_s26 }
  0x22   : > { %p1197_p6 = scmp.lt.s32.totalorder %s1188_s17, %s1188_s17 }
  0x23   : > { %p1191_p0 = pnand %p1189_p11, %p1153_p13 }
  0x24   : > { %p1198_p3 = por %p1197_p6, %p1196_p9 }
  0x25   : > { %p1192_p1 = pneg %p1191_p0 }
  0x26   : > { %1089 = dma.hbm_to_vmem [thread:$0]  (!%p1390_p12), %s1595_s5, 2048, %s276_s23, [#allocation3], %s1275_s28, %s1275_s28, %s1276_s29  }
  0x27   : > { %p1199_p2 = pnand %p1198_p3, %p1192_p1 }
  0x29   : > { %1202 = shalt.err (!%p1199_p2)
}
  0x2a   : > { %1092 = dma.hbm_to_vmem [thread:$0]  (!%p1390_p12), %s1586_s7, 2048, %s292_s26, [#allocation6], %s1275_s28, %s1275_s28, %s1276_s29  }
  0x2b   : > { %344 = sbr.rel (%p1382_p10) target bundleno = 707 (0x2c3), region = 56  ;;  %p1596_p4 = scmp.eq.s32.totalorder (!%p1382_p10), %s1354_s13, 0 }
  0x30   : > { %1246 = dma.done.wait (%p1596_p4), [#allocation3], 2048   ;;  %p1597_p13 = pmov %p1596_p4 }
  0x31   : > { %p1598_p7 = pmov %p1596_p4 }
  0x32   : > { %1248 = vsyncadd (%p1597_p13), [#allocation3], 4294965248 }
  0x33   : > { %1250 = dma.done.wait (%p1598_p7), [#allocation6], 2048   ;;  %p1599_p6 = pmov %p1596_p4 }
  0x34   : > { %s1423_s23 = smul.u32 3, %s1354_s13  ;;  %v1277_v0 = vmov 0.0   ;;  %vm1278_vm0 = vmmov 0   ;;  %v1279_v1 = vmov 0   ;;  %vm475_vm1 = vcmask 1046528   ;;  %v435_v3 = vld [vmem:[%s1581_s2 + $0x10] sm:$0xff] }
  0x35   : > { %1252 = vsyncadd (%p1599_p6), [#allocation6], 4294965248  ;;  %977 = vmatprep.subr.mxu0 %v1277_v0  ;;  %985 = vmatprep.mubr.msk.f32.mxu0 %vm1278_vm0, %v1277_v0  ;;  %v436_v2 = vld [vmem:[%s1581_s2 + $0x18] sm:$0x7f]  ;;  %v434_v4 = vld [vmem:[%s1581_s2 + $0x8] sm:$0xff]  ;;  %vm465_vm2 = vcmask 252928  }
  0x36   : > { %p402_p9 = scmp.lt.s32.totalorder %s1423_s23, 4  ;;  %1143 = vset.pattern.permute.xlu0 %v1279_v1  ;;  %1144 = vset.pattern.permute.xlu1 %v1279_v1  ;;  %v587_v7 = vld [vmem:[#allocation2 + $0x78] sm:$0xff]  ;;  %v433_v8 = vld [vmem:[%s1581_s2] sm:$0xff]  ;;  %v586_v11 = vld [vmem:[#allocation2 + $0x70] sm:$0xff]  ;;  %s394_s22 = sand.u32 1, %s1263_s10  }
  0x37   : > { %994 = vmatprep.subr.mxu1 %v1277_v0  ;;  %1026 = vmatprep.mubr.msk.f32.mxu1 %vm1278_vm0, %v1277_v0  ;;  %v585_v12 = vld [vmem:[#allocation2 + $0x68] sm:$0xff]  ;;  %v584_v14 = vld [vmem:[#allocation2 + $0x60] sm:$0xff]  ;;  %v583_v15 = vld [vmem:[#allocation2 + $0x58] sm:$0xff]  ;;  %s1520_s28 = scalar_lea.sflag [#allocation4], %s394_s22  ;;  %s799_s5 = ssub.s32 (%p1371_p5), 5, %s1423_s23 }
  0x38   : > { %s403_s21 = scalar_select %p402_p9, %s1423_s23, 4  ;;  %978 = vmatpush3.msk.msra.mxu0 %vm475_vm1, %v436_v2  ;;  %995 = vmatpush3.msra.mxu1 %v587_v7  ;;  %v582_v17 = vld [vmem:[#allocation2 + $0x50] sm:$0xff]  ;;  %v581_v18 = vld [vmem:[#allocation2 + $0x48] sm:$0xff]  ;;  %v580_v19 = vld [vmem:[#allocation2 + $0x40] sm:$0xff] }
  0x39   : > { %979 = vmatprep.subr.mxu0 %v1277_v0  ;;  %996 = vmatprep.subr.mxu1 %v1277_v0  ;;  %v579_v20 = vld [vmem:[#allocation2 + $0x38] sm:$0xff]  ;;  %v578_v21 = vld [vmem:[#allocation2 + $0x30] sm:$0xff]  ;;  %v577_v22 = vld [vmem:[#allocation2 + $0x28] sm:$0xff]  ;;  %p800_p10 = scmp.lt.s32.totalorder (%p1371_p5), %s799_s5, 3 }
  0x3a   : > { %s914_s24 = sshll.u32 %s403_s21, 3  ;;  %980 = vmatpush3.msra.mxu0 %v435_v3  ;;  %997 = vmatpush3.msra.mxu1 %v586_v11  ;;  %v576_v23 = vld [vmem:[#allocation2 + $0x20] sm:$0xff]  ;;  %v575_v24 = vld [vmem:[#allocation2 + $0x18] sm:$0xff]  ;;  %v574_v25 = vld [vmem:[#allocation2 + $0x10] sm:$0xff] }
  0x3b   : > { %s419_s17 = scalar_lea.vmem %s1580_s1, %s914_s24  ;;  %s1449_s26 = scalar_lea.vmem %s1579_s0, %s914_s24  ;;  %981 = vmatprep.subr.mxu0 %v1277_v0  ;;  %998 = vmatprep.subr.mxu1 %v1277_v0  ;;  %v573_v26 = vld [vmem:[#allocation2 + $0x8] sm:$0xff]  ;;  %v572_v27 = vld [vmem:[#allocation2] sm:$0xff]  ;;  %v693_v28 = vld [vmem:[#allocation5 + $0x78] sm:$0xff] }
  0x3c   : > { %v437_v5 = vld [vmem:[%s419_s17] sm:$0xff]  ;;  %v439_v6 = vld [vmem:[%s419_s17 + $0x10] sm:$0xff]  ;;  %v438_v9 = vld [vmem:[%s419_s17 + $0x8] sm:$0xff]  ;;  %982 = vmatpush3.msra.mxu0 %v434_v4  ;;  %999 = vmatpush3.msra.mxu1 %v585_v12 }
  0x3d   : > { %443 = vperm.xlu0 %1143, %v437_v5   ;;  %453 = vperm.xlu1 %1144, %v439_v6   ;;  %v430_v10 = vld [vmem:[%s1449_s26] sm:$0xff]  ;;  %v431_v13 = vld [vmem:[%s1449_s26 + $0x8] sm:$0xff]  ;;  %v432_v16 = vld [vmem:[%s1449_s26 + $0x10] sm:$0xff]  ;;  %s1076_s26 = smul.u32 24, %s394_s22 }
  0x3e   : > { %983 = vmatprep.subr.mxu0 %v1277_v0  ;;  %1000 = vmatprep.subr.mxu1 %v1277_v0  ;;  %v692_v29 = vld [vmem:[#allocation5 + $0x70] sm:$0xff]  ;;  %v691_v30 = vld [vmem:[#allocation5 + $0x68] sm:$0xff]  ;;  %v690_v31 = vld [vmem:[#allocation5 + $0x60] sm:$0xff] }
  0x3f   : > { %984 = vmatpush3.msra.mxu0 %v433_v8  ;;  %1001 = vmatpush3.msra.mxu1 %v584_v14  ;;  %v689_v32 = vld [vmem:[#allocation5 + $0x58] sm:$0xff]  ;;  %v688_v33 = vld [vmem:[#allocation5 + $0x50] sm:$0xff]  ;;  %v687_v34 = vld [vmem:[#allocation5 + $0x48] sm:$0xff]  ;;  %s396_s27 = scalar_lea.vmem [#allocation7], %s1076_s26 }
  0x40   : > { %986 = vmatmul.mubr.msk.f32.vlgmr.msra.gmra.mxu0 %vm465_vm2, %v430_v10  ;;  %1035 = vmatprep.subr.mxu0 %v1277_v0  ;;  %v686_v35 = vld [vmem:[#allocation5 + $0x40] sm:$0xff]  ;;  %v685_v36 = vld [vmem:[#allocation5 + $0x38] sm:$0xff]  ;;  %v684_v37 = vld [vmem:[#allocation5 + $0x30] sm:$0xff] }
  0x41   : > { %448 = vperm.xlu0 %1143, %v438_v9   ;;  %988 = vmatprep.mubr.msk.f32.mxu0 %vm1278_vm0, %v1277_v0  ;;  %v683_v38 = vld [vmem:[#allocation5 + $0x28] sm:$0xff]  ;;  %v682_v39 = vld [vmem:[#allocation5 + $0x20] sm:$0xff]  ;;  %v681_v40 = vld [vmem:[#allocation5 + $0x18] sm:$0xff] }
  0x42   : > { %1002 = vmatprep.subr.mxu1 %v1277_v0  ;;  %1036 = vmatpush3.msra.mxu0 %v693_v28  ;;  %v916_v41 = vld [vmem:[%s1582_s3] ss:$0 sm:$0xff]  ;;  %v680_v1 = vld [vmem:[#allocation5 + $0x10] sm:$0xff]  ;;  %v679_v2 = vld [vmem:[#allocation5 + $0x8] sm:$0xff] }
  0x43   : > { %1003 = vmatpush3.msra.mxu1 %v583_v15  ;;  %1037 = vmatprep.subr.mxu0 %v1277_v0  ;;  %v921_v46 = vld [vmem:[%s1583_s4] ss:$0 sm:$0xff] }
  0x44   : > { %989 = vmatmul.mubr.msk.f32.gmra.mxu0 %vm465_vm2, %v431_v13  ;;  %1004 = vmatprep.subr.mxu1 %v1277_v0  ;;  %v678_v3 = vld [vmem:[#allocation5] sm:$0xff] }
  0x45   : > { %991 = vmatprep.mubr.msk.f32.mxu0 %vm1278_vm0, %v1277_v0  ;;  %1005 = vmatpush3.msra.mxu1 %v582_v17  ;;  %v922_v4 = vld [vmem:[%s1585_s6] ss:$0 sm:$0xff] }
  0x46   : > { %1006 = vmatprep.subr.mxu1 %v1277_v0  ;;  %1038 = vmatpush3.msra.mxu0 %v692_v29  ;;  %v923_v17 = vld [vmem:[%s1587_s8] ss:$0 sm:$0xff] }
  0x47   : > { %1007 = vmatpush3.msra.mxu1 %v581_v18  ;;  %1039 = vmatprep.subr.mxu0 %v1277_v0 }
  0x48   : > { %992 = vmatmul.mubr.msk.f32.gmra.mxu0 %vm465_vm2, %v432_v16  ;;  %1008 = vmatprep.subr.mxu1 %v1277_v0 }
  0x49   : > { %1067 = vmatprep.mubr.msk.f32.mxu0 %vm1278_vm0, %v1277_v0  ;;  %1009 = vmatpush3.msra.mxu1 %v580_v19 }
  0x4a   : > { %1010 = vmatprep.subr.mxu1 %v1277_v0  ;;  %1040 = vmatpush3.msra.mxu0 %v691_v30 }
  0x4b   : > { %1011 = vmatpush3.msra.mxu1 %v579_v20  ;;  %1041 = vmatprep.subr.mxu0 %v1277_v0 }
  0x4c   : > { %1012 = vmatprep.subr.mxu1 %v1277_v0  ;;  %1042 = vmatpush3.msra.mxu0 %v690_v31 }
  0x4d   : > { %1013 = vmatpush3.msra.mxu1 %v578_v21  ;;  %1043 = vmatprep.subr.mxu0 %v1277_v0 }
  0x4e   : > { %1014 = vmatprep.subr.mxu1 %v1277_v0  ;;  %1044 = vmatpush3.msra.mxu0 %v689_v32 }
  0x4f   : > { %1015 = vmatpush3.msra.mxu1 %v577_v22  ;;  %1045 = vmatprep.subr.mxu0 %v1277_v0 }
  0x50   : > { %1016 = vmatprep.subr.mxu1 %v1277_v0  ;;  %1046 = vmatpush3.msra.mxu0 %v688_v33 }
  0x51   : > { %1017 = vmatpush3.msra.mxu1 %v576_v23  ;;  %1047 = vmatprep.subr.mxu0 %v1277_v0 }
  0x52   : > { %1018 = vmatprep.subr.mxu1 %v1277_v0  ;;  %1048 = vmatpush3.msra.mxu0 %v687_v34 }
  0x53   : > { %1019 = vmatpush3.msra.mxu1 %v575_v24  ;;  %1049 = vmatprep.subr.mxu0 %v1277_v0 }
  0x54   : > { %1020 = vmatprep.subr.mxu1 %v1277_v0  ;;  %1050 = vmatpush3.msra.mxu0 %v686_v35 }
  0x55   : > { %1021 = vmatpush3.msra.mxu1 %v574_v25  ;;  %1051 = vmatprep.subr.mxu0 %v1277_v0 }
  0x56   : > { %1022 = vmatprep.subr.mxu1 %v1277_v0  ;;  %1052 = vmatpush3.msra.mxu0 %v685_v36 }
  0x57   : > { %1023 = vmatpush3.msra.mxu1 %v573_v26  ;;  %1053 = vmatprep.subr.mxu0 %v1277_v0 }
  0x58   : > { %1024 = vmatprep.subr.mxu1 %v1277_v0  ;;  %1054 = vmatpush3.msra.mxu0 %v684_v37 }
  0x59   : > { %1025 = vmatpush3.msra.mxu1 %v572_v27  ;;  %1055 = vmatprep.subr.mxu0 %v1277_v0 }
  0x5a   : > { %1056 = vmatpush3.msra.mxu0 %v683_v38 }
  0x5b   : > { %1057 = vmatprep.subr.mxu0 %v1277_v0 }
  0x5c   : > { %1058 = vmatpush3.msra.mxu0 %v682_v39 }
  0x5d   : > { %1059 = vmatprep.subr.mxu0 %v1277_v0 }
  0x5e   : > { %1060 = vmatpush3.msra.mxu0 %v681_v40 }
  0x5f   : > { %1061 = vmatprep.subr.mxu0 %v1277_v0 }
  0x60   : > { %1062 = vmatpush3.msra.mxu0 %v680_v1 }
  0x61   : > { %1063 = vmatprep.subr.mxu0 %v1277_v0 }
  0x62   : > { %1064 = vmatpush3.msra.mxu0 %v679_v2 }
  0x63   : > { %1065 = vmatprep.subr.mxu0 %v1277_v0 }
  0x64   : > { %1066 = vmatpush3.msra.mxu0 %v678_v3 }
  0xb8   : > { %v444_v42 = vpop.permute.xlu0 %443  ;;  %v454_v49 = vpop.permute.xlu1 %453 }
  0xb9   : > { %v462_v43 = vmul.f32 %v916_v41, %v444_v42  ;;  %v464_v55 = vmul.f32 %v916_v41, %v454_v49 }
  0xbc   : > { %v449_v44 = vpop.permute.xlu0 %448 }
  0xbd   : > { %v463_v50 = vmul.f32 %v916_v41, %v449_v44 }
 0x100   : > { %v545_v45 = vpop.f32.mrf.mxu0 }
 0x101   : > { %v546_v47 = vadd.f32 %v545_v45, %v462_v43 }
 0x102   : > { %v987_v48 = vpop.f32.mrf.mxu0 }
 0x103   : > { %v566_v51 = vadd.f32 %v921_v46, %v546_v47 }
 0x104   : > { %v550_v52 = vpop.f32.mrf.mxu0 }
 0x105   : > { %v569_v53 = vmax.f32 %v566_v51, 0.0  ;;  %v551_v54 = vadd.f32 %v550_v52, %v463_v50 }
 0x106   : > { %v990_v56 = vpop.f32.mrf.mxu0 }
 0x107   : > { %v567_v57 = vadd.f32 %v921_v46, %v551_v54  ;;  %1027 = vmatmul.mubr.f32.vlgmr.msra.gmra.mxu1 %v569_v53 }
 0x108   : > { %v555_v58 = vpop.f32.mrf.mxu0  ;;  %1029 = vmatprep.mubr.msk.f32.mxu1 %vm1278_vm0, %v1277_v0 }
 0x109   : > { %v570_v59 = vmax.f32 %v567_v57, 0.0  ;;  %v556_v60 = vadd.f32 %v555_v58, %v464_v55 }
 0x10a   : > { %v993_v61 = vpop.f32.mrf.mxu0 }
 0x10b   : > { %v568_v62 = vadd.f32 %v921_v46, %v556_v60  ;;  %1030 = vmatmul.mubr.f32.gmra.mxu1 %v570_v59 }
 0x10c   : > { %1032 = vmatprep.mubr.msk.f32.mxu1 %vm1278_vm0, %v1277_v0 }
 0x10d   : > { %v571_v63 = vmax.f32 %v568_v62, 0.0 }
 0x10f   : > { %1033 = vmatmul.mubr.f32.gmra.mxu1 %v571_v63 }
 0x1c7   : > { %v661_v5 = vpop.f32.mrf.mxu1 }
 0x1c8   : > { %v662_v6 = vadd.f32 %v922_v4, %v661_v5 }
 0x1c9   : > { %v1028_v7 = vpop.f32.mrf.mxu1 }
 0x1ca   : > { %v675_v8 = vmax.f32 %v662_v6, 0.0 }
 0x1cb   : > { %v666_v9 = vpop.f32.mrf.mxu1 }
 0x1cc   : > { %v667_v10 = vadd.f32 %v922_v4, %v666_v9  ;;  %1068 = vmatmul.mubr.f32.vlgmr.msra.gmra.mxu0 %v675_v8 }
 0x1cd   : > { %v1031_v11 = vpop.f32.mrf.mxu1  ;;  %1070 = vmatprep.mubr.msk.f32.mxu0 %vm1278_vm0, %v1277_v0 }
 0x1ce   : > { %v676_v12 = vmax.f32 %v667_v10, 0.0 }
 0x1cf   : > { %v671_v13 = vpop.f32.mrf.mxu1 }
 0x1d0   : > { %v672_v14 = vadd.f32 %v922_v4, %v671_v13  ;;  %1071 = vmatmul.mubr.f32.gmra.mxu0 %v676_v12 }
 0x1d1   : > { %v1034_v15 = vpop.f32.mrf.mxu1  ;;  %1073 = vmatprep.mubr.msk.f32.mxu0 %vm1278_vm0, %v1277_v0 }
 0x1d2   : > { %v677_v16 = vmax.f32 %v672_v14, 0.0 }
 0x1d4   : > { %1074 = vmatmul.mubr.f32.gmra.mxu0 %v677_v16 }
 0x28c   : > { %v767_v18 = vpop.f32.mrf.mxu0 }
 0x28d   : > { %v768_v19 = vadd.f32 %v923_v17, %v767_v18 }
 0x28e   : > { %v1069_v20 = vpop.f32.mrf.mxu0 }
 0x28f   : > { %1145 = vtanh.f32 %v768_v19 }
 0x290   : > { %v772_v21 = vpop.f32.mrf.mxu0 }
 0x291   : > { %v773_v22 = vadd.f32 %v923_v17, %v772_v21 }
 0x292   : > { %v1072_v23 = vpop.f32.mrf.mxu0 }
 0x293   : > { %1147 = vtanh.f32 %v773_v22 }
 0x294   : > { %v777_v24 = vpop.f32.mrf.mxu0 }
 0x295   : > { %v778_v25 = vadd.f32 %v923_v17, %v777_v24 }
 0x296   : > { %v1075_v26 = vpop.f32.mrf.mxu0 }
 0x297   : > { %1149 = vtanh.f32 %v778_v25 }
 0x29c   : > { %v1146_v0 = vpop.eup %1145 }
 0x29d   : > { %v784_v27 = vmul.f32 2.0, %v1146_v0 }
 0x29f   : > { %787 = vst [vmem:[%s396_s27] sm:$0xff] %v784_v27 }
 0x2a0   : > { %v1148_v28 = vpop.eup %1147 }
 0x2a1   : > { %v785_v29 = vmul.f32 2.0, %v1148_v28 }
 0x2a3   : > { %788 = vst [vmem:[%s396_s27 + $0x8] sm:$0xff] %v785_v29  ;;  %797 = sbr.rel (!%p1371_p5) target bundleno = 707 (0x2c3), region = 68 }
 0x2a4   : > { %v1150_v30 = vpop.eup %1149 }
 0x2a5   : > { %v786_v31 = vmul.f32 2.0, %v1150_v30 }
 0x2a7   : > { %789 = vst [vmem:[%s396_s27 + $0x10] sm:$0xff] %v786_v31 }
 0x2a8   : > { %s1606_s5 = smov (!%p800_p10, %s799_s5), 3 }
 0x2a9   : > { %s1525_s24 = sshll.u32 %s1606_s5, 7 }
 0x2aa   : > { %s804_s29 = ssub.s32 384, %s1525_s24 }
 0x2ab   : > { %805 = vsyncadd %s1520_s28, %s804_s29  ;;  %p925_p12 = scmp.ne.s32.totalorder %s1525_s24, 0  ;;  %s931_s14 = smul.u32 384, %s1354_s13 }
 0x2ac   : > { %s810_s16 = sshll.u32 %s396_s27, 4  ;;  %s1280_s25 = smov [#allocation7]   ;;  %s1536_s16 = int_to_ptr.vmem [resolvable:$true] %s810_s16 }
 0x2ad   : > { %s1534_s22 = scalar_lea.hbm %s1588_s9, %s931_s14  ;;  %s1203_s23 = scalar_lea.vmem %s1536_s16, %s1525_s24 }
 0x2ae   : > { %p1204_p5 = scmp.ne.s32.totalorder %s1536_s16, %s1203_s23  ;;  %s1207_s21 = sshll.u32 %s1280_s25, 4  ;;  %s1208_s21 = int_to_ptr.vmem [resolvable:$false] %s1207_s21 }
 0x2af   : > { %s1209_s13 = scalar_lea.vmem %s1208_s21, 768  ;;  %p1210_p0 = scmp.lt.s32.totalorder %s1536_s16, %s1208_s21 }
 0x2b0   : > { %p1205_p8 = pnand %p1204_p5, %p925_p12  ;;  %p1211_p1 = scmp.lt.s32.totalorder %s1209_s13, %s1203_s23 }
 0x2b2   : > { %p1206_p11 = pneg %p1205_p8  ;;  %p1212_p3 = por %p1211_p1, %p1210_p0 }
 0x2b4   : > { %p1213_p2 = pnand %p1212_p3, %p1206_p11 }
 0x2b6   : > { %1216 = shalt.err (!%p1213_p2)
}
 0x2b7   : > { %s1217_s26 = scalar_lea.hbm %s1534_s22, %s1525_s24  ;;  %s1221_s29 = scalar_lea.hbm %s1588_s9, 640 }
 0x2b8   : > { %p1218_p4 = scmp.ne.s32.totalorder %s1534_s22, %s1217_s26  ;;  %p1222_p6 = scmp.lt.s32.totalorder %s1534_s22, %s1588_s9 }
 0x2b9   : > { %p1223_p9 = scmp.lt.s32.totalorder %s1221_s29, %s1217_s26 }
 0x2ba   : > { %p1219_p13 = pnand %p1218_p4, %p925_p12 }
 0x2bb   : > { %p1224_p10 = por %p1223_p9, %p1222_p6 }
 0x2bc   : > { %p1220_p7 = pneg %p1219_p13 }
 0x2be   : > { %p1225_p5 = pnand %p1224_p10, %p1220_p7 }
 0x2c0   : > { %1228 = shalt.err (!%p1225_p5)
}
 0x2c1   : > { %s1281_s19 = smov 128   ;;  %s1282_s23 = smov 8  }
 0x2c2   : > { %816 = dma.vmem_to_hbm [thread:$0]  (%p925_p12), %s1536_s16, %s1525_s24, %s1534_s22, %s1520_s28, %s1281_s19, %s1281_s19, %s1282_s23  }
 0x2c3 PF: > { %p1101_p8 = scmp.ge.s32.totalorder %s1271_s12, 2  ;;  %s825_s25 = sand.u32 1, %s1259_s30  }
 0x2c4   : > { %p1600_p11 = scmp.ne.s32.totalorder %s1592_s20, 0  ;;  %s826_s21 = scalar_lea.sflag [#allocation4], %s825_s25 }
 0x2c6   : > { %p1094_p0 = pnand %p1101_p8, %p1600_p11 }
 0x2c8   : > { %p1095_p1 = pneg %p1094_p0 }
 0x2ca   : > { %1254 = dma.done.wait (%p1095_p1), %s826_s21, 384  }
 0x2cb   : > { %1256 = vsyncadd (%p1095_p1), %s826_s21, 4294966912  ;;  %p21_p3 = scmp.ge.s32.totalorder %s1358_s15, 4   ;;  %s1601_s30 = smov %s1263_s10 }
 0x2cc   : > { %s1602_s10 = smov %s1267_s11  ;;  %s1603_s11 = smov %s1369_s18 }
 0x2cd   : > { %s1604_s12 = smov %s1358_s15  ;;  %23 = sbr.rel (!%p21_p3) target bundleno = 7 (0x7), region = 103 }
 0x2d2   :  { %831 = vsyncpa [#allocation3], 1 }
 0x2d3   :  { %833 = vsyncpa [#allocation3 + $0x1], 1 }
 0x2d4   :  { %834 = vsyncpa [#allocation6], 1 }
 0x2d5   :  { %835 = vsyncpa [#allocation4], 1 }
 0x2d6   :  { %837 = vsyncpa [#allocation4 + $0x1], 1 }

// kernel: tpu_custom_call.1
= control target key start
LH: loop header
LB: loop body
LE: loop exit
PB: predicated region body
PF: predicated region fallthrough
CT: control target
= control target key end

     0   :  { %s1579_s0 = inlined_call_operand.vmem [shape: f32[40,31], index: 0, kind: input, shape index: {}]   ;;  %s1580_s1 = inlined_call_operand.vmem [shape: f32[40,1], index: 1, kind: input, shape index: {}]   ;;  %s1581_s2 = inlined_call_operand.vmem [shape: f32[31,128], index: 2, kind: input, shape index: {}]   ;;  %s1582_s3 = inlined_call_operand.vmem [shape: f32[1,128], index: 3, kind: input, shape index: {}]   ;;  %s1583_s4 = inlined_call_operand.vmem [shape: f32[1,128], index: 4, kind: input, shape index: {}]   ;;  %s1584_s5 = inlined_call_operand.hbm [shape: f32[128,128], index: 5, kind: input, shape index: {}]   ;;  %s1585_s6 = inlined_call_operand.vmem [shape: f32[1,128], index: 6, kind: input, shape index: {}]   ;;  %s1586_s7 = inlined_call_operand.hbm [shape: f32[128,128], index: 7, kind: input, shape index: {}]   ;;  %s1587_s8 = inlined_call_operand.vmem [shape: f32[1,128], index: 8, kind: input, shape index: {}]   ;;  %s1588_s9 = inlined_call_operand.hbm [shape: f32[40,128], index: 9, kind: output, shape index: {}]  }
   0x1   :  { %1590 = sst [smem:[#allocation11_spill]] %s1584_s5 }
   0x2   :  { %14 = vsyncpa [#allocation3], 0 }
   0x3   :  { %15 = vsyncpa [#allocation6], 0 }
   0x4   :  { %16 = vsyncpa [#allocation4], 0 }
   0x5   :  { %18 = vsyncpa [#allocation4 + $0x1], 0  ;;  %s1333_s30 = smov 0   ;;  %s1335_s10 = smov 0  }
   0x6   :  { %s1337_s11 = smov 0   ;;  %s1339_s12 = smov 0  }
   0x7 LB: > { %s1354_s13 = sadd.s32 4294967295, %s1271_s12   ;;  %s906_s14 = sadd.s32 4294967294, %s1271_s12   ;;  %s1271_s12 = sphi %s1339_s12, %s1604_s12   ;;  %s1267_s11 = sphi %s1337_s11, %s1603_s11   ;;  %s1263_s10 = sphi %s1335_s10, %s1602_s10   ;;  %s1259_s30 = sphi %s1333_s30, %s1601_s30  }
   0x8   : > { %s1358_s15 = sadd.s32 1, %s1271_s12   ;;  %s230_s16 = sadd.s32 1, %s1267_s11 }
   0x9   : > { %s227_s17 = ssub.s32 %s1271_s12, %s1358_s15  ;;  %p240_p0 = scmp.ne.s32.totalorder %s1267_s11, %s1263_s10 }
   0xa   : > { %p228_p1 = scmp.eq.s32.totalorder %s227_s17, 0  ;;  %p241_p2 = scmp.eq.s32.totalorder %s1354_s13, 1 }
   0xb   : > { %p246_p3 = scmp.ne.s32.totalorder %s1263_s10, %s1259_s30  ;;  %p247_p4 = scmp.eq.s32.totalorder %s906_s14, 1 }
   0xc   : > { %s1369_s18 = scalar_select %p228_p1, %s1267_s11, %s230_s16  }
   0xd   : > { %p1371_p5 = por %p241_p2, %p240_p0  ;;  %p1375_p6 = por %p247_p4, %p246_p3 }
   0xe   : > { %p907_p7 = scmp.ge.s32.totalorder %s1271_s12, 1  ;;  %p254_p8 = scmp.lt.s32.totalorder %s1271_s12, 3 }
   0xf   : > { %s1592_s20 = scalar_select %p1375_p6, 1, 0 }
  0x10   : > { %p1589_p9 = scmp.eq.s32.totalorder %s1354_s13, 0  ;;  %p1382_p10 = pnand %p907_p7, %p254_p8 }
  0x11   : > { %s1273_s22 = smov [#allocation2]   ;;  %s1274_s25 = smov [#allocation5]  }
  0x12   : > { %s275_s23 = sshll.u32 %s1273_s22, 4  ;;  %p1086_p11 = pneg %p1382_p10  ;;  %s276_s23 = int_to_ptr.vmem [resolvable:$true] %s275_s23 }
  0x13   : > { %s291_s26 = sshll.u32 %s1274_s25, 4  ;;  %s1162_s27 = scalar_lea.vmem %s276_s23, 2048  ;;  %s292_s26 = int_to_ptr.vmem [resolvable:$true] %s291_s26 }
  0x14   : > { %p1390_p12 = pnand %p1589_p9, %p1086_p11  ;;  %p1163_p0 = scmp.ne.s32.totalorder %s276_s23, %s1162_s27 }
  0x15   : > { %p1170_p3 = scmp.lt.s32.totalorder %s276_s23, %s276_s23  ;;  %p1171_p4 = scmp.lt.s32.totalorder %s1162_s27, %s1162_s27 }
  0x16   : > { %p1153_p13 = pneg %p1390_p12 }
  0x17   : > { %p1172_p7 = por %p1171_p4, %p1170_p3 }
  0x18   : > { %p1165_p1 = pnand %p1163_p0, %p1153_p13 }
  0x1a   : > { %p1166_p2 = pneg %p1165_p1 }
  0x1c   : > { %p1173_p8 = pnand %p1172_p7, %p1166_p2 }
  0x1e   : > { %1176 = shalt.err (!%p1173_p8)
}
  0x1f   : > { %s1275_s28 = smov 128   ;;  %s1276_s29 = smov 8  }
  0x20   : > { %s1595_s5 = sld [smem:[#allocation11_spill]]  ;;  %s1188_s17 = scalar_lea.vmem %s292_s26, 2048 }
  0x21   : > { %p1189_p11 = scmp.ne.s32.totalorder %s292_s26, %s1188_s17  ;;  %p1196_p9 = scmp.lt.s32.totalorder %s292_s26, %s292_s26 }
  0x22   : > { %p1197_p6 = scmp.lt.s32.totalorder %s1188_s17, %s1188_s17 }
  0x23   : > { %p1191_p0 = pnand %p1189_p11, %p1153_p13 }
  0x24   : > { %p1198_p3 = por %p1197_p6, %p1196_p9 }
  0x25   : > { %p1192_p1 = pneg %p1191_p0 }
  0x26   : > { %1089 = dma.hbm_to_vmem [thread:$0]  (!%p1390_p12), %s1595_s5, 2048, %s276_s23, [#allocation3], %s1275_s28, %s1275_s28, %s1276_s29  }
  0x27   : > { %p1199_p2 = pnand %p1198_p3, %p1192_p1 }
  0x29   : > { %1202 = shalt.err (!%p1199_p2)
}
  0x2a   : > { %1092 = dma.hbm_to_vmem [thread:$0]  (!%p1390_p12), %s1586_s7, 2048, %s292_s26, [#allocation6], %s1275_s28, %s1275_s28, %s1276_s29  }
  0x2b   : > { %344 = sbr.rel (%p1382_p10) target bundleno = 707 (0x2c3), region = 56  ;;  %p1596_p4 = scmp.eq.s32.totalorder (!%p1382_p10), %s1354_s13, 0 }
  0x30   : > { %1246 = dma.done.wait (%p1596_p4), [#allocation3], 2048   ;;  %p1597_p13 = pmov %p1596_p4 }
  0x31   : > { %p1598_p7 = pmov %p1596_p4 }
  0x32   : > { %1248 = vsyncadd (%p1597_p13), [#allocation3], 4294965248 }
  0x33   : > { %1250 = dma.done.wait (%p1598_p7), [#allocation6], 2048   ;;  %p1599_p6 = pmov %p1596_p4 }
  0x34   : > { %s1423_s23 = smul.u32 3, %s1354_s13  ;;  %v1277_v0 = vmov 0.0   ;;  %vm1278_vm0 = vmmov 0   ;;  %v1279_v1 = vmov 0   ;;  %vm475_vm1 = vcmask 1046528   ;;  %v435_v3 = vld [vmem:[%s1581_s2 + $0x10] sm:$0xff] }
  0x35   : > { %1252 = vsyncadd (%p1599_p6), [#allocation6], 4294965248  ;;  %977 = vmatprep.subr.mxu0 %v1277_v0  ;;  %985 = vmatprep.mubr.msk.f32.mxu0 %vm1278_vm0, %v1277_v0  ;;  %v436_v2 = vld [vmem:[%s1581_s2 + $0x18] sm:$0x7f]  ;;  %v434_v4 = vld [vmem:[%s1581_s2 + $0x8] sm:$0xff]  ;;  %vm465_vm2 = vcmask 252928  }
  0x36   : > { %p402_p9 = scmp.lt.s32.totalorder %s1423_s23, 4  ;;  %1143 = vset.pattern.permute.xlu0 %v1279_v1  ;;  %1144 = vset.pattern.permute.xlu1 %v1279_v1  ;;  %v587_v7 = vld [vmem:[#allocation2 + $0x78] sm:$0xff]  ;;  %v433_v8 = vld [vmem:[%s1581_s2] sm:$0xff]  ;;  %v586_v11 = vld [vmem:[#allocation2 + $0x70] sm:$0xff]  ;;  %s394_s22 = sand.u32 1, %s1263_s10  }
  0x37   : > { %994 = vmatprep.subr.mxu1 %v1277_v0  ;;  %1026 = vmatprep.mubr.msk.f32.mxu1 %vm1278_vm0, %v1277_v0  ;;  %v585_v12 = vld [vmem:[#allocation2 + $0x68] sm:$0xff]  ;;  %v584_v14 = vld [vmem:[#allocation2 + $0x60] sm:$0xff]  ;;  %v583_v15 = vld [vmem:[#allocation2 + $0x58] sm:$0xff]  ;;  %s1520_s28 = scalar_lea.sflag [#allocation4], %s394_s22  ;;  %s799_s5 = ssub.s32 (%p1371_p5), 5, %s1423_s23 }
  0x38   : > { %s403_s21 = scalar_select %p402_p9, %s1423_s23, 4  ;;  %978 = vmatpush3.msk.msra.mxu0 %vm475_vm1, %v436_v2  ;;  %995 = vmatpush3.msra.mxu1 %v587_v7  ;;  %v582_v17 = vld [vmem:[#allocation2 + $0x50] sm:$0xff]  ;;  %v581_v18 = vld [vmem:[#allocation2 + $0x48] sm:$0xff]  ;;  %v580_v19 = vld [vmem:[#allocation2 + $0x40] sm:$0xff] }
  0x39   : > { %979 = vmatprep.subr.mxu0 %v1277_v0  ;;  %996 = vmatprep.subr.mxu1 %v1277_v0  ;;  %v579_v20 = vld [vmem:[#allocation2 + $0x38] sm:$0xff]  ;;  %v578_v21 = vld [vmem:[#allocation2 + $0x30] sm:$0xff]  ;;  %v577_v22 = vld [vmem:[#allocation2 + $0x28] sm:$0xff]  ;;  %p800_p10 = scmp.lt.s32.totalorder (%p1371_p5), %s799_s5, 3 }
  0x3a   : > { %s914_s24 = sshll.u32 %s403_s21, 3  ;;  %980 = vmatpush3.msra.mxu0 %v435_v3  ;;  %997 = vmatpush3.msra.mxu1 %v586_v11  ;;  %v576_v23 = vld [vmem:[#allocation2 + $0x20] sm:$0xff]  ;;  %v575_v24 = vld [vmem:[#allocation2 + $0x18] sm:$0xff]  ;;  %v574_v25 = vld [vmem:[#allocation2 + $0x10] sm:$0xff] }
  0x3b   : > { %s419_s17 = scalar_lea.vmem %s1580_s1, %s914_s24  ;;  %s1449_s26 = scalar_lea.vmem %s1579_s0, %s914_s24  ;;  %981 = vmatprep.subr.mxu0 %v1277_v0  ;;  %998 = vmatprep.subr.mxu1 %v1277_v0  ;;  %v573_v26 = vld [vmem:[#allocation2 + $0x8] sm:$0xff]  ;;  %v572_v27 = vld [vmem:[#allocation2] sm:$0xff]  ;;  %v693_v28 = vld [vmem:[#allocation5 + $0x78] sm:$0xff] }
  0x3c   : > { %v437_v5 = vld [vmem:[%s419_s17] sm:$0xff]  ;;  %v439_v6 = vld [vmem:[%s419_s17 + $0x10] sm:$0xff]  ;;  %v438_v9 = vld [vmem:[%s419_s17 + $0x8] sm:$0xff]  ;;  %982 = vmatpush3.msra.mxu0 %v434_v4  ;;  %999 = vmatpush3.msra.mxu1 %v585_v12 }
  0x3d   : > { %443 = vperm.xlu0 %1143, %v437_v5   ;;  %453 = vperm.xlu1 %1144, %v439_v6   ;;  %v430_v10 = vld [vmem:[%s1449_s26] sm:$0xff]  ;;  %v431_v13 = vld [vmem:[%s1449_s26 + $0x8] sm:$0xff]  ;;  %v432_v16 = vld [vmem:[%s1449_s26 + $0x10] sm:$0xff]  ;;  %s1076_s26 = smul.u32 24, %s394_s22 }
  0x3e   : > { %983 = vmatprep.subr.mxu0 %v1277_v0  ;;  %1000 = vmatprep.subr.mxu1 %v1277_v0  ;;  %v692_v29 = vld [vmem:[#allocation5 + $0x70] sm:$0xff]  ;;  %v691_v30 = vld [vmem:[#allocation5 + $0x68] sm:$0xff]  ;;  %v690_v31 = vld [vmem:[#allocation5 + $0x60] sm:$0xff] }
  0x3f   : > { %984 = vmatpush3.msra.mxu0 %v433_v8  ;;  %1001 = vmatpush3.msra.mxu1 %v584_v14  ;;  %v689_v32 = vld [vmem:[#allocation5 + $0x58] sm:$0xff]  ;;  %v688_v33 = vld [vmem:[#allocation5 + $0x50] sm:$0xff]  ;;  %v687_v34 = vld [vmem:[#allocation5 + $0x48] sm:$0xff]  ;;  %s396_s27 = scalar_lea.vmem [#allocation7], %s1076_s26 }
  0x40   : > { %986 = vmatmul.mubr.msk.f32.vlgmr.msra.gmra.mxu0 %vm465_vm2, %v430_v10  ;;  %1035 = vmatprep.subr.mxu0 %v1277_v0  ;;  %v686_v35 = vld [vmem:[#allocation5 + $0x40] sm:$0xff]  ;;  %v685_v36 = vld [vmem:[#allocation5 + $0x38] sm:$0xff]  ;;  %v684_v37 = vld [vmem:[#allocation5 + $0x30] sm:$0xff] }
  0x41   : > { %448 = vperm.xlu0 %1143, %v438_v9   ;;  %988 = vmatprep.mubr.msk.f32.mxu0 %vm1278_vm0, %v1277_v0  ;;  %v683_v38 = vld [vmem:[#allocation5 + $0x28] sm:$0xff]  ;;  %v682_v39 = vld [vmem:[#allocation5 + $0x20] sm:$0xff]  ;;  %v681_v40 = vld [vmem:[#allocation5 + $0x18] sm:$0xff] }
  0x42   : > { %1002 = vmatprep.subr.mxu1 %v1277_v0  ;;  %1036 = vmatpush3.msra.mxu0 %v693_v28  ;;  %v916_v41 = vld [vmem:[%s1582_s3] ss:$0 sm:$0xff]  ;;  %v680_v1 = vld [vmem:[#allocation5 + $0x10] sm:$0xff]  ;;  %v679_v2 = vld [vmem:[#allocation5 + $0x8] sm:$0xff] }
  0x43   : > { %1003 = vmatpush3.msra.mxu1 %v583_v15  ;;  %1037 = vmatprep.subr.mxu0 %v1277_v0  ;;  %v921_v46 = vld [vmem:[%s1583_s4] ss:$0 sm:$0xff] }
  0x44   : > { %989 = vmatmul.mubr.msk.f32.gmra.mxu0 %vm465_vm2, %v431_v13  ;;  %1004 = vmatprep.subr.mxu1 %v1277_v0  ;;  %v678_v3 = vld [vmem:[#allocation5] sm:$0xff] }
  0x45   : > { %991 = vmatprep.mubr.msk.f32.mxu0 %vm1278_vm0, %v1277_v0  ;;  %1005 = vmatpush3.msra.mxu1 %v582_v17  ;;  %v922_v4 = vld [vmem:[%s1585_s6] ss:$0 sm:$0xff] }
  0x46   : > { %1006 = vmatprep.subr.mxu1 %v1277_v0  ;;  %1038 = vmatpush3.msra.mxu0 %v692_v29  ;;  %v923_v17 = vld [vmem:[%s1587_s8] ss:$0 sm:$0xff] }
  0x47   : > { %1007 = vmatpush3.msra.mxu1 %v581_v18  ;;  %1039 = vmatprep.subr.mxu0 %v1277_v0 }
  0x48   : > { %992 = vmatmul.mubr.msk.f32.gmra.mxu0 %vm465_vm2, %v432_v16  ;;  %1008 = vmatprep.subr.mxu1 %v1277_v0 }
  0x49   : > { %1067 = vmatprep.mubr.msk.f32.mxu0 %vm1278_vm0, %v1277_v0  ;;  %1009 = vmatpush3.msra.mxu1 %v580_v19 }
  0x4a   : > { %1010 = vmatprep.subr.mxu1 %v1277_v0  ;;  %1040 = vmatpush3.msra.mxu0 %v691_v30 }
  0x4b   : > { %1011 = vmatpush3.msra.mxu1 %v579_v20  ;;  %1041 = vmatprep.subr.mxu0 %v1277_v0 }
  0x4c   : > { %1012 = vmatprep.subr.mxu1 %v1277_v0  ;;  %1042 = vmatpush3.msra.mxu0 %v690_v31 }
  0x4d   : > { %1013 = vmatpush3.msra.mxu1 %v578_v21  ;;  %1043 = vmatprep.subr.mxu0 %v1277_v0 }
  0x4e   : > { %1014 = vmatprep.subr.mxu1 %v1277_v0  ;;  %1044 = vmatpush3.msra.mxu0 %v689_v32 }
  0x4f   : > { %1015 = vmatpush3.msra.mxu1 %v577_v22  ;;  %1045 = vmatprep.subr.mxu0 %v1277_v0 }
  0x50   : > { %1016 = vmatprep.subr.mxu1 %v1277_v0  ;;  %1046 = vmatpush3.msra.mxu0 %v688_v33 }
  0x51   : > { %1017 = vmatpush3.msra.mxu1 %v576_v23  ;;  %1047 = vmatprep.subr.mxu0 %v1277_v0 }
  0x52   : > { %1018 = vmatprep.subr.mxu1 %v1277_v0  ;;  %1048 = vmatpush3.msra.mxu0 %v687_v34 }
  0x53   : > { %1019 = vmatpush3.msra.mxu1 %v575_v24  ;;  %1049 = vmatprep.subr.mxu0 %v1277_v0 }
  0x54   : > { %1020 = vmatprep.subr.mxu1 %v1277_v0  ;;  %1050 = vmatpush3.msra.mxu0 %v686_v35 }
  0x55   : > { %1021 = vmatpush3.msra.mxu1 %v574_v25  ;;  %1051 = vmatprep.subr.mxu0 %v1277_v0 }
  0x56   : > { %1022 = vmatprep.subr.mxu1 %v1277_v0  ;;  %1052 = vmatpush3.msra.mxu0 %v685_v36 }
  0x57   : > { %1023 = vmatpush3.msra.mxu1 %v573_v26  ;;  %1053 = vmatprep.subr.mxu0 %v1277_v0 }
  0x58   : > { %1024 = vmatprep.subr.mxu1 %v1277_v0  ;;  %1054 = vmatpush3.msra.mxu0 %v684_v37 }
  0x59   : > { %1025 = vmatpush3.msra.mxu1 %v572_v27  ;;  %1055 = vmatprep.subr.mxu0 %v1277_v0 }
  0x5a   : > { %1056 = vmatpush3.msra.mxu0 %v683_v38 }
  0x5b   : > { %1057 = vmatprep.subr.mxu0 %v1277_v0 }
  0x5c   : > { %1058 = vmatpush3.msra.mxu0 %v682_v39 }
  0x5d   : > { %1059 = vmatprep.subr.mxu0 %v1277_v0 }
  0x5e   : > { %1060 = vmatpush3.msra.mxu0 %v681_v40 }
  0x5f   : > { %1061 = vmatprep.subr.mxu0 %v1277_v0 }
  0x60   : > { %1062 = vmatpush3.msra.mxu0 %v680_v1 }
  0x61   : > { %1063 = vmatprep.subr.mxu0 %v1277_v0 }
  0x62   : > { %1064 = vmatpush3.msra.mxu0 %v679_v2 }
  0x63   : > { %1065 = vmatprep.subr.mxu0 %v1277_v0 }
  0x64   : > { %1066 = vmatpush3.msra.mxu0 %v678_v3 }
  0xb8   : > { %v444_v42 = vpop.permute.xlu0 %443  ;;  %v454_v49 = vpop.permute.xlu1 %453 }
  0xb9   : > { %v462_v43 = vmul.f32 %v916_v41, %v444_v42  ;;  %v464_v55 = vmul.f32 %v916_v41, %v454_v49 }
  0xbc   : > { %v449_v44 = vpop.permute.xlu0 %448 }
  0xbd   : > { %v463_v50 = vmul.f32 %v916_v41, %v449_v44 }
 0x100   : > { %v545_v45 = vpop.f32.mrf.mxu0 }
 0x101   : > { %v546_v47 = vadd.f32 %v545_v45, %v462_v43 }
 0x102   : > { %v987_v48 = vpop.f32.mrf.mxu0 }
 0x103   : > { %v566_v51 = vadd.f32 %v921_v46, %v546_v47 }
 0x104   : > { %v550_v52 = vpop.f32.mrf.mxu0 }
 0x105   : > { %v569_v53 = vmax.f32 %v566_v51, 0.0  ;;  %v551_v54 = vadd.f32 %v550_v52, %v463_v50 }
 0x106   : > { %v990_v56 = vpop.f32.mrf.mxu0 }
 0x107   : > { %v567_v57 = vadd.f32 %v921_v46, %v551_v54  ;;  %1027 = vmatmul.mubr.f32.vlgmr.msra.gmra.mxu1 %v569_v53 }
 0x108   : > { %v555_v58 = vpop.f32.mrf.mxu0  ;;  %1029 = vmatprep.mubr.msk.f32.mxu1 %vm1278_vm0, %v1277_v0 }
 0x109   : > { %v570_v59 = vmax.f32 %v567_v57, 0.0  ;;  %v556_v60 = vadd.f32 %v555_v58, %v464_v55 }
 0x10a   : > { %v993_v61 = vpop.f32.mrf.mxu0 }
 0x10b   : > { %v568_v62 = vadd.f32 %v921_v46, %v556_v60  ;;  %1030 = vmatmul.mubr.f32.gmra.mxu1 %v570_v59 }
 0x10c   : > { %1032 = vmatprep.mubr.msk.f32.mxu1 %vm1278_vm0, %v1277_v0 }
 0x10d   : > { %v571_v63 = vmax.f32 %v568_v62, 0.0 }
 0x10f   : > { %1033 = vmatmul.mubr.f32.gmra.mxu1 %v571_v63 }
 0x1c7   : > { %v661_v5 = vpop.f32.mrf.mxu1 }
 0x1c8   : > { %v662_v6 = vadd.f32 %v922_v4, %v661_v5 }
 0x1c9   : > { %v1028_v7 = vpop.f32.mrf.mxu1 }
 0x1ca   : > { %v675_v8 = vmax.f32 %v662_v6, 0.0 }
 0x1cb   : > { %v666_v9 = vpop.f32.mrf.mxu1 }
 0x1cc   : > { %v667_v10 = vadd.f32 %v922_v4, %v666_v9  ;;  %1068 = vmatmul.mubr.f32.vlgmr.msra.gmra.mxu0 %v675_v8 }
 0x1cd   : > { %v1031_v11 = vpop.f32.mrf.mxu1  ;;  %1070 = vmatprep.mubr.msk.f32.mxu0 %vm1278_vm0, %v1277_v0 }
 0x1ce   : > { %v676_v12 = vmax.f32 %v667_v10, 0.0 }
 0x1cf   : > { %v671_v13 = vpop.f32.mrf.mxu1 }
 0x1d0   : > { %v672_v14 = vadd.f32 %v922_v4, %v671_v13  ;;  %1071 = vmatmul.mubr.f32.gmra.mxu0 %v676_v12 }
 0x1d1   : > { %v1034_v15 = vpop.f32.mrf.mxu1  ;;  %1073 = vmatprep.mubr.msk.f32.mxu0 %vm1278_vm0, %v1277_v0 }
 0x1d2   : > { %v677_v16 = vmax.f32 %v672_v14, 0.0 }
 0x1d4   : > { %1074 = vmatmul.mubr.f32.gmra.mxu0 %v677_v16 }
 0x28c   : > { %v767_v18 = vpop.f32.mrf.mxu0 }
 0x28d   : > { %v768_v19 = vadd.f32 %v923_v17, %v767_v18 }
 0x28e   : > { %v1069_v20 = vpop.f32.mrf.mxu0 }
 0x28f   : > { %1145 = vtanh.f32 %v768_v19 }
 0x290   : > { %v772_v21 = vpop.f32.mrf.mxu0 }
 0x291   : > { %v773_v22 = vadd.f32 %v923_v17, %v772_v21 }
 0x292   : > { %v1072_v23 = vpop.f32.mrf.mxu0 }
 0x293   : > { %1147 = vtanh.f32 %v773_v22 }
 0x294   : > { %v777_v24 = vpop.f32.mrf.mxu0 }
 0x295   : > { %v778_v25 = vadd.f32 %v923_v17, %v777_v24 }
 0x296   : > { %v1075_v26 = vpop.f32.mrf.mxu0 }
 0x297   : > { %1149 = vtanh.f32 %v778_v25 }
 0x29c   : > { %v1146_v0 = vpop.eup %1145 }
 0x29d   : > { %v784_v27 = vmul.f32 2.0, %v1146_v0 }
 0x29f   : > { %787 = vst [vmem:[%s396_s27] sm:$0xff] %v784_v27 }
 0x2a0   : > { %v1148_v28 = vpop.eup %1147 }
 0x2a1   : > { %v785_v29 = vmul.f32 2.0, %v1148_v28 }
 0x2a3   : > { %788 = vst [vmem:[%s396_s27 + $0x8] sm:$0xff] %v785_v29  ;;  %797 = sbr.rel (!%p1371_p5) target bundleno = 707 (0x2c3), region = 68 }
 0x2a4   : > { %v1150_v30 = vpop.eup %1149 }
 0x2a5   : > { %v786_v31 = vmul.f32 2.0, %v1150_v30 }
 0x2a7   : > { %789 = vst [vmem:[%s396_s27 + $0x10] sm:$0xff] %v786_v31 }
 0x2a8   : > { %s1606_s5 = smov (!%p800_p10, %s799_s5), 3 }
 0x2a9   : > { %s1525_s24 = sshll.u32 %s1606_s5, 7 }
 0x2aa   : > { %s804_s29 = ssub.s32 384, %s1525_s24 }
 0x2ab   : > { %805 = vsyncadd %s1520_s28, %s804_s29  ;;  %p925_p12 = scmp.ne.s32.totalorder %s1525_s24, 0  ;;  %s931_s14 = smul.u32 384, %s1354_s13 }
 0x2ac   : > { %s810_s16 = sshll.u32 %s396_s27, 4  ;;  %s1280_s25 = smov [#allocation7]   ;;  %s1536_s16 = int_to_ptr.vmem [resolvable:$true] %s810_s16 }
 0x2ad   : > { %s1534_s22 = scalar_lea.hbm %s1588_s9, %s931_s14  ;;  %s1203_s23 = scalar_lea.vmem %s1536_s16, %s1525_s24 }
 0x2ae   : > { %p1204_p5 = scmp.ne.s32.totalorder %s1536_s16, %s1203_s23  ;;  %s1207_s21 = sshll.u32 %s1280_s25, 4  ;;  %s1208_s21 = int_to_ptr.vmem [resolvable:$false] %s1207_s21 }
 0x2af   : > { %s1209_s13 = scalar_lea.vmem %s1208_s21, 768  ;;  %p1210_p0 = scmp.lt.s32.totalorder %s1536_s16, %s1208_s21 }
 0x2b0   : > { %p1205_p8 = pnand %p1204_p5, %p925_p12  ;;  %p1211_p1 = scmp.lt.s32.totalorder %s1209_s13, %s1203_s23 }
 0x2b2   : > { %p1206_p11 = pneg %p1205_p8  ;;  %p1212_p3 = por %p1211_p1, %p1210_p0 }
 0x2b4   : > { %p1213_p2 = pnand %p1212_p3, %p1206_p11 }
 0x2b6   : > { %1216 = shalt.err (!%p1213_p2)
}
 0x2b7   : > { %s1217_s26 = scalar_lea.hbm %s1534_s22, %s1525_s24  ;;  %s1221_s29 = scalar_lea.hbm %s1588_s9, 640 }
 0x2b8   : > { %p1218_p4 = scmp.ne.s32.totalorder %s1534_s22, %s1217_s26  ;;  %p1222_p6 = scmp.lt.s32.totalorder %s1534_s22, %s1588_s9 }
 0x2b9   : > { %p1223_p9 = scmp.lt.s32.totalorder %s1221_s29, %s1217_s26 }
 0x2ba   : > { %p1219_p13 = pnand %p1218_p4, %p925_p12 }
 0x2bb   : > { %p1224_p10 = por %p1223_p9, %p1222_p6 }
 0x2bc   : > { %p1220_p7 = pneg %p1219_p13 }
 0x2be   : > { %p1225_p5 = pnand %p1224_p10, %p1220_p7 }
 0x2c0   : > { %1228 = shalt.err (!%p1225_p5)
}
 0x2c1   : > { %s1281_s19 = smov 128   ;;  %s1282_s23 = smov 8  }
 0x2c2   : > { %816 = dma.vmem_to_hbm [thread:$0]  (%p925_p12), %s1536_s16, %s1525_s24, %s1534_s22, %s1520_s28, %s1281_s19, %s1281_s19, %s1282_s23  }
 0x2c3 PF: > { %p1101_p8 = scmp.ge.s32.totalorder %s1271_s12, 2  ;;  %s825_s25 = sand.u32 1, %s1259_s30  }
 0x2c4   : > { %p1600_p11 = scmp.ne.s32.totalorder %s1592_s20, 0  ;;  %s826_s21 = scalar_lea.sflag [#allocation4], %s825_s25 }
 0x2c6   : > { %p1094_p0 = pnand %p1101_p8, %p1600_p11 }
 0x2c8   : > { %p1095_p1 = pneg %p1094_p0 }
 0x2ca   : > { %1254 = dma.done.wait (%p1095_p1), %s826_s21, 384  }
 0x2cb   : > { %1256 = vsyncadd (%p1095_p1), %s826_s21, 4294966912  ;;  %p21_p3 = scmp.ge.s32.totalorder %s1358_s15, 4   ;;  %s1601_s30 = smov %s1263_s10 }
 0x2cc   : > { %s1602_s10 = smov %s1267_s11  ;;  %s1603_s11 = smov %s1369_s18 }
 0x2cd   : > { %s1604_s12 = smov %s1358_s15  ;;  %23 = sbr.rel (!%p21_p3) target bundleno = 7 (0x7), region = 103 }
 0x2d2   :  { %831 = vsyncpa [#allocation3], 1 }
 0x2d3   :  { %833 = vsyncpa [#allocation3 + $0x1], 1 }
 0x2d4   :  { %834 = vsyncpa [#allocation6], 1 }
 0x2d5   :  { %835 = vsyncpa [#allocation4], 1 }
 0x2d6   :  { %837 = vsyncpa [#allocation4 + $0x1], 1 }

</bundles_post_ra>
